<compile_context>
chip_gen: v5e
topology: v5e:2x2
jax: 0.10.0
libtpu: 0.0.40
codegen_flags: <defaults>
</compile_context>

<pallas_src>
import jax
import jax.numpy as jnp
from jax import lax
from jax.experimental import pallas as pl
from jax.experimental.pallas import tpu as pltpu


def _pad_to(v, m):
    return ((v + m - 1) // m) * m


def _tile_bytes(shape, dtype):
    """Conservative VMEM footprint of one buffer, padded to (8, 128) vreg tiling."""
    s = list(shape)
    if len(s) >= 2:
        s[-2] = _pad_to(s[-2], 8)
        s[-1] = _pad_to(s[-1], 128)
    elif len(s) == 1:
        s[-1] = _pad_to(s[-1], 128)
    n = 1
    for d in s:
        n *= int(d)
    return n * jnp.dtype(dtype).itemsize


def _pick_cout_tile(cout):
    """Largest lane-friendly Cout tile; falls back to full Cout when small/indivisible."""
    if cout <= 256:
        return cout
    for cand in (256, 128):
        if cout % cand == 0:
            return cand
    return cout


def _make_kernel(kh, kw, h_out, w_out):
    def kernel(x_ref, w_ref, b_ref, o_ref, acc_ref):
        # x_ref:   (1, 1, Hp, Wp, Cin)      one padded input time-slice (channels-last)
        # w_ref:   (1, kh*kw, Cin, Cb)      weights of the current temporal tap / cout tile
        # b_ref:   (1, Cb)                  bias tile
        # o_ref:   (1, 1, H, W, Cb)         output frame tile for (batch, out_time, cout)
        # acc_ref: (H*W, Cb) f32            accumulator, persistent across the tap axis
        k = pl.program_id(3)

        slab = x_ref[0, 0]                                     # (Hp, Wp, Cin)
        cin = slab.shape[-1]

        # Sum all spatial taps of this temporal tap in registers, touch acc once.
        contrib = None
        for kh_i in range(kh):
            for kw_i in range(kw):
                win = slab[kh_i:kh_i + h_out, kw_i:kw_i + w_out, :]
                win2 = win.reshape(h_out * w_out, cin)
                d = jnp.dot(win2, w_ref[0, kh_i * kw + kw_i],
                            preferred_element_type=jnp.float32)
                contrib = d if contrib is None else contrib + d

        @pl.when(k == 0)
        def _():
            acc_ref[...] = contrib

        @pl.when(k > 0)
        def _():
            acc_ref[...] = acc_ref[...] + contrib

        @pl.when(k == pl.num_programs(3) - 1)
        def _():
            out = acc_ref[...] + b_ref[...]
            o_ref[0, 0] = out.reshape(h_out, w_out, -1).astype(o_ref.dtype)

    return kernel


def causal_conv3d_pallas(x, weight, bias, *, stride=1, dilation=1,
                         pad_mode="constant", compute_dtype=jnp.float32):
    """x: (b, cin, t, h, w); weight: (cout, cin, kt, kh, kw); bias: (cout,)."""
    b, cin, t, h, w = x.shape
    cout, cin_w, kt, kh, kw = weight.shape
    assert cin == cin_w
    assert kh % 2 == 1 and kw % 2 == 1, "spatial kernel sizes must be odd"

    time_pad = dilation * (kt - 1) + (1 - stride)
    hp, wp = kh // 2, kw // 2

    mode = pad_mode if time_pad < t else "constant"
    jnp_mode = {"constant": "constant", "replicate": "edge", "reflect": "reflect"}[mode]
    xpad = jnp.pad(x, ((0, 0), (0, 0), (time_pad, 0), (hp, hp), (wp, wp)),
                   mode=jnp_mode)

    tp, hpad, wpad = t + time_pad, h + 2 * hp, w + 2 * wp
    t_out = (tp - dilation * (kt - 1) - 1) // stride + 1
    h_out, w_out = h, w

    # Channels-last / token-major layout so Cin sits on the lane axis inside the
    # kernel (single mem-bound relayout pass in the wrapper).
    x_tok = jnp.transpose(xpad, (0, 2, 3, 4, 1)).astype(compute_dtype)  # (b,Tp,Hp,Wp,Cin)

    # (Cout, Cin, kt, kh, kw) -> (kt, kh*kw, Cin, Cout): streamed one time-tap at a time.
    w_tok = jnp.transpose(weight, (2, 3, 4, 1, 0)).reshape(kt, kh * kw, cin, cout)
    w_tok = w_tok.astype(compute_dtype)
    b_tok = bias.reshape(1, cout).astype(jnp.float32)

    cout_blk = _pick_cout_tile(cout)
    n_co = cout // cout_blk

    kernel = _make_kernel(kh, kw, h_out, w_out)

    # Explicit VMEM budget: double-buffered inputs/outputs + accumulator + headroom.
    est = 2 * (_tile_bytes((hpad, wpad, cin), compute_dtype)
               + _tile_bytes((kh * kw, cin, cout_blk), compute_dtype)
               + _tile_bytes((h_out, w_out, cout_blk), x.dtype)
               + _tile_bytes((1, cout_blk), jnp.float32)) \
          + _tile_bytes((h_out * w_out, cout_blk), jnp.float32)
    vmem_limit = int(min(max(4 * est, 16 * 1024 * 1024), 48 * 1024 * 1024))

    out_tok = pl.pallas_call(
        kernel,
        out_shape=jax.ShapeDtypeStruct((b, t_out, h_out, w_out, cout), x.dtype),
        grid_spec=pltpu.PrefetchScalarGridSpec(
            num_scalar_prefetch=0,
            grid=(b, t_out, n_co, kt),
            in_specs=[
                # one padded input time-slice; time block size is 1 so the block
                # index equals the element index -> handles stride & dilation.
                pl.BlockSpec(
                    (1, 1, hpad, wpad, cin),
                    lambda bi, to, co, k: (bi, to * stride + k * dilation, 0, 0, 0)),
                # weights for temporal tap k / cout tile co only
                pl.BlockSpec((1, kh * kw, cin, cout_blk),
                             lambda bi, to, co, k: (k, 0, 0, co)),
                # bias tile (constant across the grid except cout)
                pl.BlockSpec((1, cout_blk), lambda bi, to, co, k: (0, co)),
            ],
            out_specs=pl.BlockSpec((1, 1, h_out, w_out, cout_blk),
                                   lambda bi, to, co, k: (bi, to, 0, 0, co)),
            scratch_shapes=[pltpu.VMEM((h_out * w_out, cout_blk), jnp.float32)],
        ),
        compiler_params=pltpu.CompilerParams(
            dimension_semantics=("parallel", "parallel", "parallel", "arbitrary"),
            vmem_limit_bytes=vmem_limit),
    )(x_tok, w_tok, b_tok)

    # (b, T_out, H, W, Cout) -> NCDHW
    return jnp.transpose(out_tok, (0, 4, 1, 2, 3))


def causal_conv3d_reference(x, weight, bias, *, stride=1, dilation=1,
                            pad_mode="constant"):
    """Pure-JAX reference mirroring the PyTorch CausalConv3d forward."""
    kt, kh, kw = weight.shape[2], weight.shape[3], weight.shape[4]
    time_pad = dilation * (kt - 1) + (1 - stride)
    hp, wp = kh // 2, kw // 2
    mode = pad_mode if time_pad < x.shape[2] else "constant"
    jnp_mode = {"constant": "constant", "replicate": "edge", "reflect": "reflect"}[mode]
    xpad = jnp.pad(x, ((0, 0), (0, 0), (time_pad, 0), (hp, hp), (wp, wp)),
                   mode=jnp_mode)
    out = lax.conv_general_dilated(
        xpad, weight,
        window_strides=(stride, 1, 1),
        padding="VALID",
        rhs_dilation=(dilation, 1, 1),
        dimension_numbers=("NCDHW", "OIDHW", "NCDHW"),
        precision=lax.Precision.HIGHEST)
    return out + bias.reshape(1, -1, 1, 1, 1)


def _make_conv_params(key, cin, cout, ks):
    kt, kh, kw = ks
    kw_, kb = jax.random.split(key)
    bound = 1.0 / ((cin * kt * kh * kw) ** 0.5)   # PyTorch Conv3d default init bound
    weight = jax.random.uniform(kw_, (cout, cin, kt, kh, kw), jnp.float32, -bound, bound)
    bias = jax.random.uniform(kb, (cout,), jnp.float32, -bound, bound)
    return weight, bias


if __name__ == "__main__":
    key = jax.random.PRNGKey(0)

    # (b, cin, cout, t, h, w, kernel, stride, dilation, pad_mode)
    configs = [
        (2, 4, 8, 5, 8, 8, (3, 3, 3), 1, 1, "constant"),
        (2, 4, 8, 6, 8, 8, (3, 3, 3), 2, 1, "constant"),
        (1, 4, 4, 7, 8, 8, (3, 1, 1), 1, 2, "replicate"),
    ]

    for idx, (b, cin, cout, t, h, w, ks, st, dil, pm) in enumerate(configs):
        key, kx, kp = jax.random.split(key, 3)
        x = jax.random.normal(kx, (b, cin, t, h, w), jnp.float32)
        weight, bias = _make_conv_params(kp, cin, cout, ks)

        out = causal_conv3d_pallas(x, weight, bias, stride=st, dilation=dil, pad_mode=pm)
        out = jax.block_until_ready(out)
        ref = causal_conv3d_reference(x, weight, bias, stride=st, dilation=dil, pad_mode=pm)
        assert out.shape == ref.shape, (out.shape, ref.shape)
        err = jnp.max(jnp.abs(out - ref))
        assert jnp.allclose(out, ref, rtol=1e-4, atol=1e-4), \
            f"config {idx}: max abs err {err}"

    # bf16 MXU path (f32 accumulation) -- same math, looser tolerance.
    key, kx, kp = jax.random.split(key, 3)
    x = jax.random.normal(kx, (2, 4, 5, 8, 8), jnp.float32)
    weight, bias = _make_conv_params(kp, 4, 8, (3, 3, 3))
    out_bf16 = causal_conv3d_pallas(x, weight, bias, compute_dtype=jnp.bfloat16)
    out_bf16 = jax.block_until_ready(out_bf16)
    ref = causal_conv3d_reference(x, weight, bias)
    assert jnp.allclose(out_bf16, ref, rtol=2e-2, atol=2e-2), \
        f"bf16 max abs err {jnp.max(jnp.abs(out_bf16 - ref))}"

    print("KERNEL_OK")
</pallas_src>

<mosaic_0001>
module attributes {stable_mosaic.version = 11 : i64} {
  func.func @kernel(%arg0: i32, %arg1: i32, %arg2: i32, %arg3: i32, %arg4: memref<1x1x10x10x4xf32, #tpu.memory_space<vmem>>, %arg5: memref<1x9x4x8xf32, #tpu.memory_space<vmem>>, %arg6: memref<1x8xf32, #tpu.memory_space<vmem>>, %arg7: memref<1x1x8x8x8xf32, #tpu.memory_space<vmem>>, %arg8: memref<64x8xf32, #tpu.memory_space<vmem>>) attributes {dimension_semantics = [#tpu.dimension_semantics<parallel>, #tpu.dimension_semantics<parallel>, #tpu.dimension_semantics<parallel>, #tpu.dimension_semantics<arbitrary>], iteration_bounds = array<i64: 2, 5, 1, 3>, scalar_prefetch = 0 : i64, scratch_operands = 1 : i64, tpu.core_type = #tpu.core_type<tc>, window_params = [{transform_indices = @transform_0, window_bounds = array<i64: 1, 1, 10, 10, 4>}, {transform_indices = @transform_1, window_bounds = array<i64: 1, 9, 4, 8>}, {transform_indices = @transform_2, window_bounds = array<i64: 1, 8>}, {transform_indices = @transform_3, window_bounds = array<i64: 1, 1, 8, 8, 8>}]} {
    %c0 = arith.constant 0 : index
    %c0_0 = arith.constant 0 : index
    %c0_1 = arith.constant 0 : index
    %c0_2 = arith.constant 0 : index
    %c0_3 = arith.constant 0 : index
    %0 = vector.load %arg4[%c0, %c0_0, %c0_1, %c0_2, %c0_3] : memref<1x1x10x10x4xf32, #tpu.memory_space<vmem>>, vector<1x1x10x10x4xf32>
    %1 = vector.shape_cast %0 : vector<1x1x10x10x4xf32> to vector<10x10x4xf32>
    %2 = vector.extract_strided_slice %1 {offsets = [0, 0, 0], sizes = [8, 8, 4], strides = [1, 1, 1]} : vector<10x10x4xf32> to vector<8x8x4xf32>
    %3 = vector.shape_cast %2 : vector<8x8x4xf32> to vector<64x4xf32>
    %c0_4 = arith.constant 0 : index
    %c0_5 = arith.constant 0 : index
    %c0_6 = arith.constant 0 : index
    %c0_7 = arith.constant 0 : index
    %4 = vector.load %arg5[%c0_4, %c0_5, %c0_6, %c0_7] : memref<1x9x4x8xf32, #tpu.memory_space<vmem>>, vector<1x1x4x8xf32>
    %5 = vector.shape_cast %4 : vector<1x1x4x8xf32> to vector<4x8xf32>
    %cst = arith.constant dense<0.000000e+00> : vector<64x8xf32>
    %6 = tpu.matmul %3, %5, %cst {dimension_numbers = #tpu.dot_dimension_numbers<[1], [0], [0], [1], [0, 0, 1, 1], [], []>} : vector<64x4xf32>, vector<4x8xf32>, vector<64x8xf32> -> vector<64x8xf32>
    %7 = vector.extract_strided_slice %1 {offsets = [0, 1, 0], sizes = [8, 8, 4], strides = [1, 1, 1]} : vector<10x10x4xf32> to vector<8x8x4xf32>
    %8 = vector.shape_cast %7 : vector<8x8x4xf32> to vector<64x4xf32>
    %c0_8 = arith.constant 0 : index
    %c1 = arith.constant 1 : index
    %c0_9 = arith.constant 0 : index
    %c0_10 = arith.constant 0 : index
    %9 = vector.load %arg5[%c0_8, %c1, %c0_9, %c0_10] : memref<1x9x4x8xf32, #tpu.memory_space<vmem>>, vector<1x1x4x8xf32>
    %10 = vector.shape_cast %9 : vector<1x1x4x8xf32> to vector<4x8xf32>
    %cst_11 = arith.constant dense<0.000000e+00> : vector<64x8xf32>
    %11 = tpu.matmul %8, %10, %cst_11 {dimension_numbers = #tpu.dot_dimension_numbers<[1], [0], [0], [1], [0, 0, 1, 1], [], []>} : vector<64x4xf32>, vector<4x8xf32>, vector<64x8xf32> -> vector<64x8xf32>
    %12 = arith.addf %6, %11 : vector<64x8xf32>
    %13 = vector.extract_strided_slice %1 {offsets = [0, 2, 0], sizes = [8, 8, 4], strides = [1, 1, 1]} : vector<10x10x4xf32> to vector<8x8x4xf32>
    %14 = vector.shape_cast %13 : vector<8x8x4xf32> to vector<64x4xf32>
    %c0_12 = arith.constant 0 : index
    %c2 = arith.constant 2 : index
    %c0_13 = arith.constant 0 : index
    %c0_14 = arith.constant 0 : index
    %15 = vector.load %arg5[%c0_12, %c2, %c0_13, %c0_14] : memref<1x9x4x8xf32, #tpu.memory_space<vmem>>, vector<1x1x4x8xf32>
    %16 = vector.shape_cast %15 : vector<1x1x4x8xf32> to vector<4x8xf32>
    %cst_15 = arith.constant dense<0.000000e+00> : vector<64x8xf32>
    %17 = tpu.matmul %14, %16, %cst_15 {dimension_numbers = #tpu.dot_dimension_numbers<[1], [0], [0], [1], [0, 0, 1, 1], [], []>} : vector<64x4xf32>, vector<4x8xf32>, vector<64x8xf32> -> vector<64x8xf32>
    %18 = arith.addf %12, %17 : vector<64x8xf32>
    %19 = vector.extract_strided_slice %1 {offsets = [1, 0, 0], sizes = [8, 8, 4], strides = [1, 1, 1]} : vector<10x10x4xf32> to vector<8x8x4xf32>
    %20 = vector.shape_cast %19 : vector<8x8x4xf32> to vector<64x4xf32>
    %c0_16 = arith.constant 0 : index
    %c3 = arith.constant 3 : index
    %c0_17 = arith.constant 0 : index
    %c0_18 = arith.constant 0 : index
    %21 = vector.load %arg5[%c0_16, %c3, %c0_17, %c0_18] : memref<1x9x4x8xf32, #tpu.memory_space<vmem>>, vector<1x1x4x8xf32>
    %22 = vector.shape_cast %21 : vector<1x1x4x8xf32> to vector<4x8xf32>
    %cst_19 = arith.constant dense<0.000000e+00> : vector<64x8xf32>
    %23 = tpu.matmul %20, %22, %cst_19 {dimension_numbers = #tpu.dot_dimension_numbers<[1], [0], [0], [1], [0, 0, 1, 1], [], []>} : vector<64x4xf32>, vector<4x8xf32>, vector<64x8xf32> -> vector<64x8xf32>
    %24 = arith.addf %18, %23 : vector<64x8xf32>
    %25 = vector.extract_strided_slice %1 {offsets = [1, 1, 0], sizes = [8, 8, 4], strides = [1, 1, 1]} : vector<10x10x4xf32> to vector<8x8x4xf32>
    %26 = vector.shape_cast %25 : vector<8x8x4xf32> to vector<64x4xf32>
    %c0_20 = arith.constant 0 : index
    %c4 = arith.constant 4 : index
    %c0_21 = arith.constant 0 : index
    %c0_22 = arith.constant 0 : index
    %27 = vector.load %arg5[%c0_20, %c4, %c0_21, %c0_22] : memref<1x9x4x8xf32, #tpu.memory_space<vmem>>, vector<1x1x4x8xf32>
    %28 = vector.shape_cast %27 : vector<1x1x4x8xf32> to vector<4x8xf32>
    %cst_23 = arith.constant dense<0.000000e+00> : vector<64x8xf32>
    %29 = tpu.matmul %26, %28, %cst_23 {dimension_numbers = #tpu.dot_dimension_numbers<[1], [0], [0], [1], [0, 0, 1, 1], [], []>} : vector<64x4xf32>, vector<4x8xf32>, vector<64x8xf32> -> vector<64x8xf32>
    %30 = arith.addf %24, %29 : vector<64x8xf32>
    %31 = vector.extract_strided_slice %1 {offsets = [1, 2, 0], sizes = [8, 8, 4], strides = [1, 1, 1]} : vector<10x10x4xf32> to vector<8x8x4xf32>
    %32 = vector.shape_cast %31 : vector<8x8x4xf32> to vector<64x4xf32>
    %c0_24 = arith.constant 0 : index
    %c5 = arith.constant 5 : index
    %c0_25 = arith.constant 0 : index
    %c0_26 = arith.constant 0 : index
    %33 = vector.load %arg5[%c0_24, %c5, %c0_25, %c0_26] : memref<1x9x4x8xf32, #tpu.memory_space<vmem>>, vector<1x1x4x8xf32>
    %34 = vector.shape_cast %33 : vector<1x1x4x8xf32> to vector<4x8xf32>
    %cst_27 = arith.constant dense<0.000000e+00> : vector<64x8xf32>
    %35 = tpu.matmul %32, %34, %cst_27 {dimension_numbers = #tpu.dot_dimension_numbers<[1], [0], [0], [1], [0, 0, 1, 1], [], []>} : vector<64x4xf32>, vector<4x8xf32>, vector<64x8xf32> -> vector<64x8xf32>
    %36 = arith.addf %30, %35 : vector<64x8xf32>
    %37 = vector.extract_strided_slice %1 {offsets = [2, 0, 0], sizes = [8, 8, 4], strides = [1, 1, 1]} : vector<10x10x4xf32> to vector<8x8x4xf32>
    %38 = vector.shape_cast %37 : vector<8x8x4xf32> to vector<64x4xf32>
    %c0_28 = arith.constant 0 : index
    %c6 = arith.constant 6 : index
    %c0_29 = arith.constant 0 : index
    %c0_30 = arith.constant 0 : index
    %39 = vector.load %arg5[%c0_28, %c6, %c0_29, %c0_30] : memref<1x9x4x8xf32, #tpu.memory_space<vmem>>, vector<1x1x4x8xf32>
    %40 = vector.shape_cast %39 : vector<1x1x4x8xf32> to vector<4x8xf32>
    %cst_31 = arith.constant dense<0.000000e+00> : vector<64x8xf32>
    %41 = tpu.matmul %38, %40, %cst_31 {dimension_numbers = #tpu.dot_dimension_numbers<[1], [0], [0], [1], [0, 0, 1, 1], [], []>} : vector<64x4xf32>, vector<4x8xf32>, vector<64x8xf32> -> vector<64x8xf32>
    %42 = arith.addf %36, %41 : vector<64x8xf32>
    %43 = vector.extract_strided_slice %1 {offsets = [2, 1, 0], sizes = [8, 8, 4], strides = [1, 1, 1]} : vector<10x10x4xf32> to vector<8x8x4xf32>
    %44 = vector.shape_cast %43 : vector<8x8x4xf32> to vector<64x4xf32>
    %c0_32 = arith.constant 0 : index
    %c7 = arith.constant 7 : index
    %c0_33 = arith.constant 0 : index
    %c0_34 = arith.constant 0 : index
    %45 = vector.load %arg5[%c0_32, %c7, %c0_33, %c0_34] : memref<1x9x4x8xf32, #tpu.memory_space<vmem>>, vector<1x1x4x8xf32>
    %46 = vector.shape_cast %45 : vector<1x1x4x8xf32> to vector<4x8xf32>
    %cst_35 = arith.constant dense<0.000000e+00> : vector<64x8xf32>
    %47 = tpu.matmul %44, %46, %cst_35 {dimension_numbers = #tpu.dot_dimension_numbers<[1], [0], [0], [1], [0, 0, 1, 1], [], []>} : vector<64x4xf32>, vector<4x8xf32>, vector<64x8xf32> -> vector<64x8xf32>
    %48 = arith.addf %42, %47 : vector<64x8xf32>
    %49 = vector.extract_strided_slice %1 {offsets = [2, 2, 0], sizes = [8, 8, 4], strides = [1, 1, 1]} : vector<10x10x4xf32> to vector<8x8x4xf32>
    %50 = vector.shape_cast %49 : vector<8x8x4xf32> to vector<64x4xf32>
    %c0_36 = arith.constant 0 : index
    %c8 = arith.constant 8 : index
    %c0_37 = arith.constant 0 : index
    %c0_38 = arith.constant 0 : index
    %51 = vector.load %arg5[%c0_36, %c8, %c0_37, %c0_38] : memref<1x9x4x8xf32, #tpu.memory_space<vmem>>, vector<1x1x4x8xf32>
    %52 = vector.shape_cast %51 : vector<1x1x4x8xf32> to vector<4x8xf32>
    %cst_39 = arith.constant dense<0.000000e+00> : vector<64x8xf32>
    %53 = tpu.matmul %50, %52, %cst_39 {dimension_numbers = #tpu.dot_dimension_numbers<[1], [0], [0], [1], [0, 0, 1, 1], [], []>} : vector<64x4xf32>, vector<4x8xf32>, vector<64x8xf32> -> vector<64x8xf32>
    %54 = arith.addf %48, %53 : vector<64x8xf32>
    %c0_i32 = arith.constant 0 : i32
    %55 = arith.cmpi eq, %arg3, %c0_i32 : i32
    %56 = arith.extui %55 : i1 to i32
    %c0_i32_40 = arith.constant 0 : i32
    %57 = arith.cmpi ne, %56, %c0_i32_40 : i32
    scf.if %57 {
      %c0_44 = arith.constant 0 : index
      %c0_45 = arith.constant 0 : index
      %64 = vector.load %arg8[%c0_44, %c0_45] : memref<64x8xf32, #tpu.memory_space<vmem>>, vector<64x8xf32>
      tpu.vector_store %arg8[%c0_44, %c0_45], %54 {strides = array<i32>} : memref<64x8xf32, #tpu.memory_space<vmem>>, vector<64x8xf32>,
    } else {
    }
    %c0_i32_41 = arith.constant 0 : i32
    %58 = arith.cmpi sgt, %arg3, %c0_i32_41 : i32
    %59 = arith.extui %58 : i1 to i32
    %c0_i32_42 = arith.constant 0 : i32
    %60 = arith.cmpi ne, %59, %c0_i32_42 : i32
    scf.if %60 {
      %c0_44 = arith.constant 0 : index
      %c0_45 = arith.constant 0 : index
      %64 = vector.load %arg8[%c0_44, %c0_45] : memref<64x8xf32, #tpu.memory_space<vmem>>, vector<64x8xf32>
      %65 = arith.addf %64, %54 : vector<64x8xf32>
      %c0_46 = arith.constant 0 : index
      %c0_47 = arith.constant 0 : index
      %66 = vector.load %arg8[%c0_46, %c0_47] : memref<64x8xf32, #tpu.memory_space<vmem>>, vector<64x8xf32>
      tpu.vector_store %arg8[%c0_46, %c0_47], %65 {strides = array<i32>} : memref<64x8xf32, #tpu.memory_space<vmem>>, vector<64x8xf32>,
    } else {
    }
    %c2_i32 = arith.constant 2 : i32
    %61 = arith.cmpi eq, %arg3, %c2_i32 : i32
    %62 = arith.extui %61 : i1 to i32
    %c0_i32_43 = arith.constant 0 : i32
    %63 = arith.cmpi ne, %62, %c0_i32_43 : i32
    scf.if %63 {
      %c0_44 = arith.constant 0 : index
      %c0_45 = arith.constant 0 : index
      %64 = vector.load %arg8[%c0_44, %c0_45] : memref<64x8xf32, #tpu.memory_space<vmem>>, vector<64x8xf32>
      %c0_46 = arith.constant 0 : index
      %c0_47 = arith.constant 0 : index
      %65 = vector.load %arg6[%c0_46, %c0_47] : memref<1x8xf32, #tpu.memory_space<vmem>>, vector<1x8xf32>
      %66 = vector.broadcast %65 : vector<1x8xf32> to vector<64x8xf32>
      %67 = arith.addf %64, %66 : vector<64x8xf32>
      %68 = vector.shape_cast %67 : vector<64x8xf32> to vector<8x8x8xf32>
      %c0_48 = arith.constant 0 : index
      %c0_49 = arith.constant 0 : index
      %c0_50 = arith.constant 0 : index
      %c0_51 = arith.constant 0 : index
      %c0_52 = arith.constant 0 : index
      %69 = vector.load %arg7[%c0_48, %c0_49, %c0_50, %c0_51, %c0_52] : memref<1x1x8x8x8xf32, #tpu.memory_space<vmem>>, vector<1x1x8x8x8xf32>
      %70 = vector.shape_cast %69 : vector<1x1x8x8x8xf32> to vector<8x8x8xf32>
      %71 = vector.shape_cast %68 : vector<8x8x8xf32> to vector<1x1x8x8x8xf32>
      tpu.vector_store %arg7[%c0_48, %c0_49, %c0_50, %c0_51, %c0_52], %71 {strides = array<i32>} : memref<1x1x8x8x8xf32, #tpu.memory_space<vmem>>, vector<1x1x8x8x8xf32>,
    } else {
    }
    return
  }
  func.func @transform_0(%arg0: i32, %arg1: i32, %arg2: i32, %arg3: i32) -> (i32, i32, i32, i32, i32) {
    %c1_i32 = arith.constant 1 : i32
    %0 = arith.muli %arg1, %c1_i32 : i32
    %c1_i32_0 = arith.constant 1 : i32
    %1 = arith.muli %arg3, %c1_i32_0 : i32
    %2 = arith.addi %0, %1 : i32
    %c0_i32 = arith.constant 0 : i32
    %c0_i32_1 = arith.constant 0 : i32
    %c0_i32_2 = arith.constant 0 : i32
    %c0_i32_3 = arith.constant 0 : i32
    return %arg0, %2, %c0_i32, %c0_i32_1, %c0_i32_2 : i32, i32, i32, i32, i32
  }
  func.func @transform_1(%arg0: i32, %arg1: i32, %arg2: i32, %arg3: i32) -> (i32, i32, i32, i32) {
    %c0_i32 = arith.constant 0 : i32
    %c0_i32_0 = arith.constant 0 : i32
    %c0_i32_1 = arith.constant 0 : i32
    return %arg3, %c0_i32, %c0_i32_0, %arg2 : i32, i32, i32, i32
  }
  func.func @transform_2(%arg0: i32, %arg1: i32, %arg2: i32, %arg3: i32) -> (i32, i32) {
    %c0_i32 = arith.constant 0 : i32
    %c0_i32_0 = arith.constant 0 : i32
    return %c0_i32, %arg2 : i32, i32
  }
  func.func @transform_3(%arg0: i32, %arg1: i32, %arg2: i32, %arg3: i32) -> (i32, i32, i32, i32, i32) {
    %c0_i32 = arith.constant 0 : i32
    %c0_i32_0 = arith.constant 0 : i32
    %c0_i32_1 = arith.constant 0 : i32
    return %arg0, %arg1, %c0_i32, %c0_i32_0, %arg2 : i32, i32, i32, i32, i32
  }
}

</mosaic_0001>

<bundles_post_ra>
// kernel: tpu_custom_call.1
= control target key start
LH: loop header
LB: loop body
LE: loop exit
PB: predicated region body
PF: predicated region fallthrough
CT: control target
= control target key end

     0   :  { %s1889_s0 = inlined_call_operand.vmem [shape: f32[2,7,10,10,4], index: 0, kind: input, shape index: {}]   ;;  %s1890_s1 = inlined_call_operand.vmem [shape: f32[3,9,4,8], index: 1, kind: input, shape index: {}]   ;;  %s1891_s2 = inlined_call_operand.vmem [shape: f32[1,8], index: 2, kind: input, shape index: {}]   ;;  %s1892_s3 = inlined_call_operand.hbm [shape: f32[2,5,8,8,8], index: 3, kind: output, shape index: {}]  }
   0x1   :  { %1893 = sst [smem:[#allocation6_spill]] %s1889_s0 }
   0x2   :  { %1894 = sst [smem:[#allocation7_spill]] %s1890_s1 }
   0x3   :  { %8 = vsyncpa [#allocation4], 0 }
   0x4   :  { %10 = vsyncpa [#allocation4 + $0x1], 0  ;;  %s1454_s12 = smov 0   ;;  %s1456_s13 = smov 0  }
   0x5   :  { %s1458_s14 = smov 0   ;;  %s1460_s15 = smov 0  }
   0x6   :  { %s1462_s16 = smov 0   ;;  %s1464_s17 = smov 0  }
   0x7   :  { %s1466_s18 = smov 0   ;;  %s1468_s19 = smov 0  }
   0x8   :  { %s1470_s20 = smov 0   ;;  %s1472_s21 = smov 0  }
   0x9 LB: > { %s1117_s22 = sadd.s32 4294967295, %s1430_s21   ;;  %s1118_s23 = sadd.s32 4294967294, %s1430_s21   ;;  %s1430_s21 = sphi %s1472_s21, %s16_s21   ;;  %s1426_s20 = sphi %s1470_s20, %s1907_s20   ;;  %s1422_s19 = sphi %s1468_s19, %s1906_s19   ;;  %s1418_s18 = sphi %s1466_s18, %s1905_s18   ;;  %s1414_s17 = sphi %s1464_s17, %s1904_s17   ;;  %s1410_s16 = sphi %s1462_s16, %s1903_s16   ;;  %s1406_s15 = sphi %s1460_s15, %s1902_s15   ;;  %s1402_s14 = sphi %s1458_s14, %s1901_s14   ;;  %s1398_s13 = sphi %s1456_s13, %s1900_s13   ;;  %s1394_s12 = sphi %s1454_s12, %s1899_s12  }
   0xa   : > { %s31_s24 = sadd.s32 1, %s1418_s18  ;;  %s38_s25 = sadd.s32 1, %s1422_s19 }
   0xb   : > { %p32_p0 = scmp.ge.s32.totalorder %s31_s24, 3  ;;  %s42_s26 = sadd.s32 1, %s1426_s20 }
   0xc   : > { %p147_p1 = scmp.ne.s32.totalorder %s1402_s14, %s1398_s13  ;;  %p148_p2 = scmp.eq.s32.totalorder %s1117_s22, 29 }
   0xd   : > { %s1909_s24 = smov (%p32_p0, %s31_s24), 0  ;;  %s1911_s25 = smov (!%p32_p0, %s38_s25), %s1422_s19 }
   0xe   : > { %p153_p3 = scmp.ne.s32.totalorder %s1398_s13, %s1394_s12  ;;  %p40_p4 = scmp.ge.s32.totalorder %s1911_s25, 5 }
   0xf   : > { %p154_p5 = scmp.eq.s32.totalorder %s1118_s23, 29  ;;  %p1516_p6 = por %p148_p2, %p147_p1 }
  0x10   : > { %s1913_s25 = smov (%p40_p4, %s1911_s25), 0  ;;  %s1915_s26 = smov (!%p40_p4, %s42_s26), %s1426_s20 }
  0x11   : > { %p1523_p7 = por %p154_p5, %p153_p3  ;;  %p1122_p8 = scmp.ge.s32.totalorder %s1430_s21, 1 }
  0x12   : > { %p44_p9 = scmp.ge.s32.totalorder %s1915_s26, 2  ;;  %p203_p10 = scmp.lt.s32.totalorder %s1430_s21, 31 }
  0x13   : > { %s131_s29 = ssub.s32 %s1422_s19, %s1913_s25  ;;  %s137_s5 = sadd.s32 1, %s1402_s14 }
  0x14   : > { %s1917_s26 = smov (%p44_p9, %s1915_s26), 0  ;;  %p204_p11 = pnand %p1122_p8, %p203_p10 }
  0x15   : > { %s130_s30 = ssub.s32 %s1426_s20, %s1917_s26  ;;  %p254_p13 = scmp.lt.s32.totalorder (!%p204_p11), %s1406_s15, 2 }
  0x16   : > { %s132_s4 = sor.u32 %s131_s29, %s130_s30  ;;  %207 = sbr.rel (%p204_p11) target bundleno = 381 (0x17d), region = 32 }
  0x17   : > { %p135_p12 = scmp.eq.s32.totalorder %s132_s4, 0  ;;  %s243_s7 = sadd.s32 (!%p204_p11), %s1406_s15, %s1410_s16 }
  0x18   : > { %p244_p0 = scmp.lt.s32.totalorder (!%p204_p11), %s1414_s17, 1  ;;  %p246_p1 = scmp.lt.s32.totalorder (!%p204_p11), %s243_s7, 6 }
  0x19   : > { %s1537_s6 = scalar_select %p135_p12, %s1402_s14, %s137_s5  }
  0x1a   : > { %s240_s11 = sand.u32 (!%p204_p11), 1, %s1398_s13   ;;  %s1897_s1 = sld [smem:[#allocation7_spill]] (!%p204_p11) }
  0x1b   : > { %s255_s8 = scalar_select %p254_p13, %s1406_s15, 2  ;;  %vm346_vm0 = vcmask 1043456   ;;  %vm302_vm1 = vcmask 1046528   ;;  %vm329_vm2 = vcmask 31744   ;;  %vm451_vm3 = vcmask 1045504  }
  0x1c   : > { %s245_s9 = scalar_select %p244_p0, %s1414_s17, 1 }
  0x1d   : > { %s1228_s10 = smul.u32 36, %s255_s8  ;;  %s1919_s7 = smov (!%p246_p1, %s243_s7), 6 }
  0x1e   : > { %s1227_s30 = smul.u32 140, %s245_s9  ;;  %s1555_s5 = sshll.u32 %s240_s11, 6 }
  0x1f   : > { %s1226_s4 = smul.u32 20, %s1919_s7  ;;  %s1898_s0 = sld [smem:[#allocation6_spill]] }
  0x20   : > { %s1549_s29 = scalar_lea.vmem %s1897_s1, %s1228_s10  ;;  %s1799_s23 = scalar_lea.vmem [#allocation3], %s1555_s5 }
  0x21   : > { %v1126_v0 = vld [vmem:[%s1549_s29 + $0x4] sm:$0xf]  ;;  %v1145_v1 = vld [vmem:[%s1549_s29 + $0x8] sm:$0xf]  ;;  %v1155_v2 = vld [vmem:[%s1549_s29 + $0xc] sm:$0xf]  ;;  %s250_s8 = sadd.s32 %s1227_s30, %s1226_s4 }
  0x22   : > { %1223 = vmatpush.msk.msra.mxu1 %vm346_vm0, %v1126_v0  ;;  %1224 = vmatpush.msk.msra.mxu2 %vm346_vm0, %v1126_v0  ;;  %v285_v3 = vld [vmem:[%s1549_s29] sm:$0xf]  ;;  %v1165_v4 = vld [vmem:[%s1549_s29 + $0x10] sm:$0xf]  ;;  %s1124_s9 = sshll.u32 %s250_s8, 3  ;;  %p1215_p2 = scmp.ne.s32.totalorder %s1406_s15, 0 }
  0x23   : > { %1225 = vmatpush.msk.msra.mxu3 %vm346_vm0, %v1126_v0  ;;  %1127 = vmatpush.msk.msra.mxu0 %vm346_vm0, %v1126_v0  ;;  %v1175_v8 = vld [vmem:[%s1549_s29 + $0x14] sm:$0xf]  ;;  %v1185_v14 = vld [vmem:[%s1549_s29 + $0x18] sm:$0xf]  ;;  %v1195_v19 = vld [vmem:[%s1549_s29 + $0x1c] sm:$0xf] }
  0x24   : > { %1146 = vmatpush.msk.msrb.mxu2 %vm346_vm0, %v1145_v1  ;;  %1136 = vmatpush.msk.msrb.mxu1 %vm346_vm0, %v285_v3  ;;  %v1205_v29 = vld [vmem:[%s1549_s29 + $0x20] sm:$0xf] }
  0x25   : > { %1156 = vmatpush.msk.msrb.mxu3 %vm346_vm0, %v1155_v2  ;;  %s1569_s22 = scalar_lea.vmem %s1898_s0, %s1124_s9  ;;  %1166 = vmatpush.msk.msrb.mxu0 %vm346_vm0, %v1165_v4 }
  0x26   : > { %v1573_v5 = vld [vmem:[%s1569_s22 + $0x20] sm:$0xff]  ;;  %v1576_v6 = vld [vmem:[%s1569_s22 + $0x28] sm:$0x3]  ;;  %v1599_v18 = vld [vmem:[%s1569_s22 + $0x30] sm:$0xff] }
  0x27   : > { %v1579_v7 = vld [vmem:[%s1569_s22 + $0x40] sm:$0xff]  ;;  %v309_v9 = vrot.slane %v1573_v5, 1  ;;  %v310_v10 = vrot.slane %v1576_v6, 1  ;;  %v1586_v11 = vld [vmem:[%s1569_s22 + $0x48] sm:$0x3]  ;;  %v1610_v23 = vld [vmem:[%s1569_s22 + $0x50] sm:$0xff] }
  0x28   : > { %v315_v12 = vrot.slane %v1579_v7, 1  ;;  %v1590_v13 = vld [vmem:[%s1569_s22 + $0x60] sm:$0xff]  ;;  %v316_v15 = vrot.slane %v1586_v11, 1  ;;  %v1595_v16 = vld [vmem:[%s1569_s22 + $0x68] sm:$0x3]  ;;  %v312_v26 = vrot.slane %v1599_v18, 1 }
  0x29   : > { %v321_v17 = vrot.slane %v1590_v13, 1  ;;  %v1603_v20 = vsel %vm302_vm1, %v309_v9, %v310_v10  ;;  %v322_v21 = vrot.slane %v1595_v16, 1  ;;  %v1607_v22 = vld [vmem:[%s1569_s22 + $0x38] sm:$0x3]  ;;  %v265_v27 = vld [vmem:[%s1569_s22] sm:$0xff]  ;;  %v1631_v34 = vld [vmem:[%s1569_s22 + $0x70] sm:$0xff] }
  0x2a   : > { %v1613_v24 = vld [vmem:[%s1569_s22 + $0x58] sm:$0x3]  ;;  %1130 = vmatmul.msk.f32.vlgmr.msra.gmra.mxu1 %vm329_vm2, %v1603_v20  ;;  %v1618_v25 = vsel %vm302_vm1, %v315_v12, %v316_v15  ;;  %v266_v28 = vld [vmem:[%s1569_s22 + $0x8] sm:$0x3]  ;;  %v313_v31 = vrot.slane %v1607_v22, 1  ;;  %v303_v32 = vrot.slane %v265_v27, 1 }
  0x2b   : > { %1132 = vmatmul.msk.f32.vlgmr.msra.gmra.mxu2 %vm329_vm2, %v1618_v25  ;;  %v1627_v30 = vsel %vm302_vm1, %v321_v17, %v322_v21  ;;  %v304_v33 = vrot.slane %v266_v28, 1  ;;  %v1634_v35 = vld [vmem:[%s1569_s22 + $0x78] sm:$0x3]  ;;  %1176 = vmatpush.msk.msra.mxu1 %vm346_vm0, %v1175_v8  ;;  %v318_v36 = vrot.slane %v1610_v23, 1  ;;  %v319_v37 = vrot.slane %v1613_v24, 1  ;;  %v267_v38 = vld [vmem:[%s1569_s22 + $0x10] sm:$0xff] }
  0x2c   : > { %1134 = vmatmul.msk.f32.vlgmr.msra.gmra.mxu3 %vm329_vm2, %v1627_v30  ;;  %1186 = vmatpush.msk.msra.mxu2 %vm346_vm0, %v1185_v14  ;;  %v268_v39 = vld [vmem:[%s1569_s22 + $0x18] sm:$0x3]  ;;  %v324_v41 = vrot.slane %v1631_v34, 1  ;;  %v325_v42 = vrot.slane %v1634_v35, 1  ;;  %v1650_v43 = vsel %vm302_vm1, %v312_v26, %v313_v31  ;;  %v306_v44 = vrot.slane %v267_v38, 1 }
  0x2d   : > { %v305_v40 = vsel %vm302_vm1, %v303_v32, %v304_v33  ;;  %1196 = vmatpush.msk.msra.mxu3 %vm346_vm0, %v1195_v19  ;;  %v307_v45 = vrot.slane %v268_v39, 1  ;;  %v1654_v46 = vsel %vm302_vm1, %v318_v36, %v319_v37  ;;  %v452_v49 = vrot.slane %v265_v27, 2  ;;  %v282_v10 = vld [vmem:[%s1569_s22 + $0x88] sm:$0x3] }
  0x2e   : > { %1128 = vmatmul.msk.f32.vlgmr.msra.gmra.mxu0 %vm329_vm2, %v305_v40  ;;  %v1657_v47 = vsel %vm302_vm1, %v324_v41, %v325_v42  ;;  %v453_v50 = vrot.slane %v266_v28, 2  ;;  %v455_v52 = vrot.slane %v267_v38, 2  ;;  %v456_v53 = vrot.slane %v268_v39, 2 }
  0x2f   : > { %1206 = vmatpush.msk.msra.mxu0 %vm346_vm0, %v1205_v29  ;;  %v308_v48 = vsel %vm302_vm1, %v306_v44, %v307_v45  ;;  %v458_v55 = vrot.slane %v1573_v5, 2  ;;  %v459_v56 = vrot.slane %v1576_v6, 2  ;;  %v461_v58 = vrot.slane %v1599_v18, 2 }
  0x30   : > { %v454_v51 = vsel %vm451_vm3, %v452_v49, %v453_v50  ;;  %v457_v54 = vsel %vm451_vm3, %v455_v52, %v456_v53  ;;  %v462_v59 = vrot.slane %v1607_v22, 2  ;;  %v464_v61 = vrot.slane %v1579_v7, 2 }
  0x31   : > { %v460_v57 = vsel %vm451_vm3, %v458_v55, %v459_v56  ;;  %v465_v62 = vrot.slane %v1586_v11, 2  ;;  %v467_v0 = vrot.slane %v1610_v23, 2  ;;  %v468_v1 = vrot.slane %v1613_v24, 2  ;;  %v281_v11 = vld [vmem:[%s1569_s22 + $0x80] sm:$0xff] }
  0x32   : > { %1131 = vmatmul.msk.f32.gmra.mxu1 %vm329_vm2, %v1650_v43  ;;  %v463_v60 = vsel %vm451_vm3, %v461_v58, %v462_v59  ;;  %v470_v3 = vrot.slane %v1590_v13, 2  ;;  %v471_v4 = vrot.slane %v1595_v16, 2  ;;  %v473_v8 = vrot.slane %v1631_v34, 2 }
  0x33   : > { %1133 = vmatmul.msk.f32.gmra.mxu2 %vm329_vm2, %v1654_v46  ;;  %v466_v63 = vsel %vm451_vm3, %v464_v61, %v465_v62  ;;  %v469_v2 = vsel %vm451_vm3, %v467_v0, %v468_v1  ;;  %v474_v9 = vrot.slane %v1634_v35, 2  ;;  %v604_v12 = vrot.slane %v281_v11, 1 }
  0x34   : > { %1135 = vmatmul.msk.f32.gmra.mxu3 %vm329_vm2, %v1657_v47  ;;  %v472_v6 = vsel %vm451_vm3, %v470_v3, %v471_v4  ;;  %v605_v14 = vrot.slane %v282_v10, 1  ;;  %v664_v17 = vrot.slane %v282_v10, 2 }
  0x35   : > { %v475_v15 = vsel %vm451_vm3, %v473_v8, %v474_v9 }
  0x36   : > { %1129 = vmatmul.msk.f32.gmra.mxu0 %vm329_vm2, %v308_v48  ;;  %v606_v16 = vsel %vm302_vm1, %v604_v12, %v605_v14 }
  0x3a   : > { %1137 = vmatmul.msk.f32.vlgmr.msrb.gmra.mxu1 %vm329_vm2, %v265_v27 }
  0x3b   : > { %1147 = vmatmul.msk.f32.vlgmr.msrb.gmra.mxu2 %vm329_vm2, %v454_v51 }
  0x3c   : > { %1157 = vmatmul.msk.f32.vlgmr.msrb.gmra.mxu3 %vm329_vm2, %v267_v38 }
  0x3e   : > { %1167 = vmatmul.msk.f32.vlgmr.msrb.gmra.mxu0 %vm329_vm2, %v308_v48 }
  0x42   : > { %1138 = vmatmul.msk.f32.gmra.mxu1 %vm329_vm2, %v267_v38 }
  0x43   : > { %1148 = vmatmul.msk.f32.gmra.mxu2 %vm329_vm2, %v457_v54 }
  0x44   : > { %1158 = vmatmul.msk.f32.gmra.mxu3 %vm329_vm2, %v1573_v5 }
  0x46   : > { %1168 = vmatmul.msk.f32.gmra.mxu0 %vm329_vm2, %v1603_v20 }
  0x4a   : > { %1139 = vmatmul.msk.f32.gmra.mxu1 %vm329_vm2, %v1573_v5 }
  0x4b   : > { %1149 = vmatmul.msk.f32.gmra.mxu2 %vm329_vm2, %v460_v57 }
  0x4c   : > { %1159 = vmatmul.msk.f32.gmra.mxu3 %vm329_vm2, %v1599_v18 }
  0x4e   : > { %1169 = vmatmul.msk.f32.gmra.mxu0 %vm329_vm2, %v1650_v43 }
  0x52   : > { %1140 = vmatmul.msk.f32.gmra.mxu1 %vm329_vm2, %v1599_v18 }
  0x53   : > { %1150 = vmatmul.msk.f32.gmra.mxu2 %vm329_vm2, %v463_v60 }
  0x54   : > { %1160 = vmatmul.msk.f32.gmra.mxu3 %vm329_vm2, %v1579_v7 }
  0x56   : > { %1170 = vmatmul.msk.f32.gmra.mxu0 %vm329_vm2, %v1618_v25 }
  0x5a   : > { %1141 = vmatmul.msk.f32.gmra.mxu1 %vm329_vm2, %v1579_v7 }
  0x5b   : > { %1151 = vmatmul.msk.f32.gmra.mxu2 %vm329_vm2, %v466_v63 }
  0x5c   : > { %1161 = vmatmul.msk.f32.gmra.mxu3 %vm329_vm2, %v1610_v23 }
  0x5e   : > { %1171 = vmatmul.msk.f32.gmra.mxu0 %vm329_vm2, %v1654_v46 }
  0x62   : > { %1142 = vmatmul.msk.f32.gmra.mxu1 %vm329_vm2, %v1610_v23 }
  0x63   : > { %1152 = vmatmul.msk.f32.gmra.mxu2 %vm329_vm2, %v469_v2 }
  0x64   : > { %1162 = vmatmul.msk.f32.gmra.mxu3 %vm329_vm2, %v1590_v13 }
  0x66   : > { %1172 = vmatmul.msk.f32.gmra.mxu0 %vm329_vm2, %v1627_v30 }
  0x6a   : > { %1143 = vmatmul.msk.f32.gmra.mxu1 %vm329_vm2, %v1590_v13 }
  0x6b   : > { %1153 = vmatmul.msk.f32.gmra.mxu2 %vm329_vm2, %v472_v6 }
  0x6c   : > { %1163 = vmatmul.msk.f32.gmra.mxu3 %vm329_vm2, %v1631_v34 }
  0x6e   : > { %1173 = vmatmul.msk.f32.gmra.mxu0 %vm329_vm2, %v1657_v47 }
  0x72   : > { %1144 = vmatmul.msk.f32.gmra.mxu1 %vm329_vm2, %v1631_v34 }
  0x73   : > { %1154 = vmatmul.msk.f32.gmra.mxu2 %vm329_vm2, %v475_v15 }
  0x74   : > { %1164 = vmatmul.msk.f32.gmra.mxu3 %vm329_vm2, %v281_v11 }
  0x76   : > { %1174 = vmatmul.msk.f32.gmra.mxu0 %vm329_vm2, %v606_v16 }
  0x7a   : > { %1177 = vmatmul.msk.f32.vlgmr.msra.gmra.mxu1 %vm329_vm2, %v457_v54 }
  0x7b   : > { %1187 = vmatmul.msk.f32.vlgmr.msra.gmra.mxu2 %vm329_vm2, %v1573_v5 }
  0x7c   : > { %1197 = vmatmul.msk.f32.vlgmr.msra.gmra.mxu3 %vm329_vm2, %v1603_v20 }
  0x7e   : > { %1207 = vmatmul.msk.f32.vlgmr.msra.gmra.mxu0 %vm329_vm2, %v460_v57 }
  0x82   : > { %1178 = vmatmul.msk.f32.gmra.mxu1 %vm329_vm2, %v460_v57 }
  0x83   : > { %1188 = vmatmul.msk.f32.gmra.mxu2 %vm329_vm2, %v1599_v18  ;;  %v284_v18 = vld [vmem:[%s1569_s22 + $0x98] sm:$0x3] }
  0x84   : > { %1198 = vmatmul.msk.f32.gmra.mxu3 %vm329_vm2, %v1650_v43  ;;  %v781_v22 = vrot.slane %v284_v18, 1  ;;  %v840_v27 = vrot.slane %v284_v18, 2 }
  0x86   : > { %1208 = vmatmul.msk.f32.gmra.mxu0 %vm329_vm2, %v463_v60 }
  0x8a   : > { %1179 = vmatmul.msk.f32.gmra.mxu1 %vm329_vm2, %v463_v60 }
  0x8b   : > { %1189 = vmatmul.msk.f32.gmra.mxu2 %vm329_vm2, %v1579_v7  ;;  %v663_v7 = vrot.slane %v281_v11, 2 }
  0x8c   : > { %1199 = vmatmul.msk.f32.gmra.mxu3 %vm329_vm2, %v1618_v25 }
  0x8d   : > { %v665_v20 = vsel %vm451_vm3, %v663_v7, %v664_v17 }
  0x8e   : > { %1209 = vmatmul.msk.f32.gmra.mxu0 %vm329_vm2, %v466_v63 }
  0x92   : > { %1180 = vmatmul.msk.f32.gmra.mxu1 %vm329_vm2, %v466_v63 }
  0x93   : > { %1190 = vmatmul.msk.f32.gmra.mxu2 %vm329_vm2, %v1610_v23 }
  0x94   : > { %1200 = vmatmul.msk.f32.gmra.mxu3 %vm329_vm2, %v1654_v46 }
  0x96   : > { %1210 = vmatmul.msk.f32.gmra.mxu0 %vm329_vm2, %v469_v2 }
  0x9a   : > { %1181 = vmatmul.msk.f32.gmra.mxu1 %vm329_vm2, %v469_v2 }
  0x9b   : > { %1191 = vmatmul.msk.f32.gmra.mxu2 %vm329_vm2, %v1590_v13  ;;  %v283_v13 = vld [vmem:[%s1569_s22 + $0x90] sm:$0xff] }
  0x9c   : > { %1201 = vmatmul.msk.f32.gmra.mxu3 %vm329_vm2, %v1627_v30  ;;  %v780_v21 = vrot.slane %v283_v13, 1  ;;  %v839_v26 = vrot.slane %v283_v13, 2 }
  0x9e   : > { %1211 = vmatmul.msk.f32.gmra.mxu0 %vm329_vm2, %v472_v6  ;;  %v782_v28 = vsel %vm302_vm1, %v780_v21, %v781_v22  ;;  %v841_v30 = vsel %vm451_vm3, %v839_v26, %v840_v27 }
  0xa2   : > { %1182 = vmatmul.msk.f32.gmra.mxu1 %vm329_vm2, %v472_v6 }
  0xa3   : > { %1192 = vmatmul.msk.f32.gmra.mxu2 %vm329_vm2, %v1631_v34 }
  0xa4   : > { %1202 = vmatmul.msk.f32.gmra.mxu3 %vm329_vm2, %v1657_v47 }
  0xa6   : > { %1212 = vmatmul.msk.f32.gmra.mxu0 %vm329_vm2, %v475_v15 }
  0xa7   : > { %v373_v5 = vpop.f32.mrf.mxu1 }
  0xaa   : > { %1183 = vmatmul.msk.f32.gmra.mxu1 %vm329_vm2, %v475_v15 }
  0xab   : > { %1193 = vmatmul.msk.f32.gmra.mxu2 %vm329_vm2, %v281_v11  ;;  %v367_v19 = vpop.f32.mrf.mxu0 }
  0xac   : > { %1203 = vmatmul.msk.f32.gmra.mxu3 %vm329_vm2, %v606_v16 }
  0xae   : > { %v379_v23 = vpop.f32.mrf.mxu2  ;;  %1213 = vmatmul.msk.f32.gmra.mxu0 %vm329_vm2, %v665_v20 }
  0xaf   : > { %v376_v24 = vpop.f32.mrf.mxu1  ;;  %v385_v25 = vpop.f32.mrf.mxu3 }
  0xb2   : > { %1184 = vmatmul.msk.f32.gmra.mxu1 %vm329_vm2, %v665_v20 }
  0xb3   : > { %1194 = vmatmul.msk.f32.gmra.mxu2 %vm329_vm2, %v283_v13  ;;  %v370_v29 = vpop.f32.mrf.mxu0 }
  0xb4   : > { %1204 = vmatmul.msk.f32.gmra.mxu3 %vm329_vm2, %v782_v28 }
  0xb6   : > { %v382_v31 = vpop.f32.mrf.mxu2  ;;  %1214 = vmatmul.msk.f32.gmra.mxu0 %vm329_vm2, %v841_v30 }
  0xb7   : > { %v1789_v32 = vpop.f32.mrf.mxu3  ;;  %v427_v33 = vpop.f32.mrf.mxu1 }
  0xb8   : > { %v428_v34 = vadd.f32 %v427_v33, %v367_v19 }
  0xbb   : > { %v631_v35 = vpop.f32.mrf.mxu0 }
  0xbe   : > { %v514_v36 = vpop.f32.mrf.mxu2 }
  0xbf   : > { %v538_v37 = vadd.f32 %v514_v36, %v428_v34  ;;  %v430_v38 = vpop.f32.mrf.mxu1  ;;  %v571_v39 = vpop.f32.mrf.mxu3 }
  0xc0   : > { %v431_v40 = vadd.f32 %v430_v38, %v370_v29 }
  0xc1   : > { %v595_v41 = vadd.f32 %v571_v39, %v538_v37 }
  0xc3   : > { %v655_v42 = vadd.f32 %v631_v35, %v595_v41  ;;  %v634_v43 = vpop.f32.mrf.mxu0 }
  0xc6   : > { %v517_v44 = vpop.f32.mrf.mxu2 }
  0xc7   : > { %v539_v45 = vadd.f32 %v517_v44, %v431_v40  ;;  %v433_v46 = vpop.f32.mrf.mxu1  ;;  %v574_v47 = vpop.f32.mrf.mxu3 }
  0xc8   : > { %v434_v48 = vadd.f32 %v433_v46, %v373_v5 }
  0xc9   : > { %v596_v49 = vadd.f32 %v574_v47, %v539_v45 }
  0xcb   : > { %v656_v50 = vadd.f32 %v634_v43, %v596_v49  ;;  %v637_v51 = vpop.f32.mrf.mxu0 }
  0xce   : > { %v520_v52 = vpop.f32.mrf.mxu2 }
  0xcf   : > { %v540_v53 = vadd.f32 %v520_v52, %v434_v48  ;;  %v436_v54 = vpop.f32.mrf.mxu1  ;;  %v577_v55 = vpop.f32.mrf.mxu3 }
  0xd0   : > { %v437_v56 = vadd.f32 %v436_v54, %v376_v24 }
  0xd1   : > { %v597_v57 = vadd.f32 %v577_v55, %v540_v53 }
  0xd3   : > { %v657_v58 = vadd.f32 %v637_v51, %v597_v57  ;;  %v640_v59 = vpop.f32.mrf.mxu0 }
  0xd6   : > { %v523_v60 = vpop.f32.mrf.mxu2 }
  0xd7   : > { %v541_v61 = vadd.f32 %v523_v60, %v437_v56  ;;  %v439_v62 = vpop.f32.mrf.mxu1  ;;  %v580_v63 = vpop.f32.mrf.mxu3 }
  0xd8   : > { %v440_v0 = vadd.f32 %v439_v62, %v379_v23 }
  0xd9   : > { %v598_v1 = vadd.f32 %v580_v63, %v541_v61 }
  0xdb   : > { %v658_v2 = vadd.f32 %v640_v59, %v598_v1  ;;  %v643_v3 = vpop.f32.mrf.mxu0 }
  0xde   : > { %v526_v4 = vpop.f32.mrf.mxu2 }
  0xdf   : > { %v542_v6 = vadd.f32 %v526_v4, %v440_v0  ;;  %v442_v8 = vpop.f32.mrf.mxu1  ;;  %v583_v9 = vpop.f32.mrf.mxu3 }
  0xe0   : > { %v443_v10 = vadd.f32 %v442_v8, %v382_v31 }
  0xe1   : > { %v599_v11 = vadd.f32 %v583_v9, %v542_v6 }
  0xe3   : > { %v659_v12 = vadd.f32 %v643_v3, %v599_v11  ;;  %v646_v14 = vpop.f32.mrf.mxu0 }
  0xe6   : > { %v529_v15 = vpop.f32.mrf.mxu2 }
  0xe7   : > { %v543_v16 = vadd.f32 %v529_v15, %v443_v10  ;;  %v445_v5 = vpop.f32.mrf.mxu1  ;;  %v586_v7 = vpop.f32.mrf.mxu3 }
  0xe8   : > { %v446_v17 = vadd.f32 %v445_v5, %v385_v25 }
  0xe9   : > { %v600_v13 = vadd.f32 %v586_v7, %v543_v16 }
  0xeb   : > { %v660_v18 = vadd.f32 %v646_v14, %v600_v13  ;;  %v649_v19 = vpop.f32.mrf.mxu0 }
  0xee   : > { %v532_v20 = vpop.f32.mrf.mxu2 }
  0xef   : > { %v544_v21 = vadd.f32 %v532_v20, %v446_v17  ;;  %v448_v22 = vpop.f32.mrf.mxu1  ;;  %v589_v23 = vpop.f32.mrf.mxu3 }
  0xf0   : > { %v449_v5 = vadd.f32 %v448_v22, %v1789_v32 }
  0xf1   : > { %v601_v24 = vadd.f32 %v589_v23, %v544_v21 }
  0xf3   : > { %v661_v26 = vadd.f32 %v649_v19, %v601_v24  ;;  %v652_v27 = vpop.f32.mrf.mxu0 }
  0xf6   : > { %v535_v28 = vpop.f32.mrf.mxu2 }
  0xf7   : > { %v592_v29 = vpop.f32.mrf.mxu3  ;;  %v690_v30 = vpop.f32.mrf.mxu1  ;;  %v545_v17 = vadd.f32 %v535_v28, %v449_v5 }
  0xf8   : > { %v714_v33 = vadd.f32 %v690_v30, %v655_v42 }
  0xf9   : > { %v602_v21 = vadd.f32 %v592_v29, %v545_v17 }
  0xfb   : > { %v866_v31 = vpop.f32.mrf.mxu0 }
  0xfe   : > { %v747_v34 = vpop.f32.mrf.mxu2 }
  0xff   : > { %v771_v35 = vadd.f32 %v747_v34, %v714_v33  ;;  %v693_v36 = vpop.f32.mrf.mxu1  ;;  %v807_v37 = vpop.f32.mrf.mxu3  ;;  %v662_v33 = vadd.f32 %v652_v27, %v602_v21 }
 0x100   : > { %v715_v40 = vadd.f32 %v693_v36, %v656_v50 }
 0x101   : > { %v831_v25 = vadd.f32 %v807_v37, %v771_v35 }
 0x103   : > { %v1791_v38 = vadd.f32 %v866_v31, %v831_v25  ;;  %v869_v39 = vpop.f32.mrf.mxu0 }
 0x106   : > { %v750_v41 = vpop.f32.mrf.mxu2 }
 0x107   : > { %v772_v43 = vadd.f32 %v750_v41, %v715_v40  ;;  %v696_v44 = vpop.f32.mrf.mxu1  ;;  %v810_v45 = vpop.f32.mrf.mxu3 }
 0x108   : > { %v716_v49 = vadd.f32 %v696_v44, %v657_v58 }
 0x109   : > { %v832_v46 = vadd.f32 %v810_v45, %v772_v43 }
 0x10b   : > { %v1793_v47 = vadd.f32 %v869_v39, %v832_v46  ;;  %v872_v48 = vpop.f32.mrf.mxu0 }
 0x10e   : > { %v753_v51 = vpop.f32.mrf.mxu2 }
 0x10f   : > { %v773_v42 = vadd.f32 %v753_v51, %v716_v49  ;;  %v699_v52 = vpop.f32.mrf.mxu1  ;;  %v813_v53 = vpop.f32.mrf.mxu3 }
 0x110   : > { %v717_v57 = vadd.f32 %v699_v52, %v658_v2 }
 0x111   : > { %v833_v54 = vadd.f32 %v813_v53, %v773_v42 }
 0x113   : > { %v1795_v55 = vadd.f32 %v872_v48, %v833_v54  ;;  %v875_v56 = vpop.f32.mrf.mxu0 }
 0x116   : > { %v756_v59 = vpop.f32.mrf.mxu2 }
 0x117   : > { %v774_v50 = vadd.f32 %v756_v59, %v717_v57  ;;  %v702_v60 = vpop.f32.mrf.mxu1  ;;  %v816_v61 = vpop.f32.mrf.mxu3 }
 0x118   : > { %v718_v1 = vadd.f32 %v702_v60, %v659_v12 }
 0x119   : > { %v834_v62 = vadd.f32 %v816_v61, %v774_v50 }
 0x11b   : > { %v893_v63 = vadd.f32 %v875_v56, %v834_v62  ;;  %v878_v0 = vpop.f32.mrf.mxu0 }
 0x11e   : > { %v759_v3 = vpop.f32.mrf.mxu2 }
 0x11f   : > { %v775_v4 = vadd.f32 %v759_v3, %v718_v1  ;;  %v705_v58 = vpop.f32.mrf.mxu1  ;;  %v819_v6 = vpop.f32.mrf.mxu3 }
 0x120   : > { %v719_v11 = vadd.f32 %v705_v58, %v660_v18 }
 0x121   : > { %v835_v8 = vadd.f32 %v819_v6, %v775_v4 }
 0x123   : > { %v894_v9 = vadd.f32 %v878_v0, %v835_v8  ;;  %v881_v10 = vpop.f32.mrf.mxu0 }
 0x126   : > { %v762_v14 = vpop.f32.mrf.mxu2 }
 0x127   : > { %v776_v15 = vadd.f32 %v762_v14, %v719_v11  ;;  %v822_v16 = vpop.f32.mrf.mxu3  ;;  %v708_v2 = vpop.f32.mrf.mxu1 }
 0x128   : > { %v720_v19 = vadd.f32 %v708_v2, %v661_v26 }
 0x129   : > { %v836_v7 = vadd.f32 %v822_v16, %v776_v15 }
 0x12b   : > { %v895_v13 = vadd.f32 %v881_v10, %v836_v7  ;;  %v884_v12 = vpop.f32.mrf.mxu0 }
 0x12e   : > { %v765_v20 = vpop.f32.mrf.mxu2 }
 0x12f   : > { %v777_v23 = vadd.f32 %v765_v20, %v720_v19  ;;  %v825_v24 = vpop.f32.mrf.mxu3  ;;  %v711_v31 = vpop.f32.mrf.mxu1 }
 0x130   : > { %v721_v34 = vadd.f32 %v711_v31, %v662_v33 }
 0x131   : > { %v837_v30 = vadd.f32 %v825_v24, %v777_v23 }
 0x133   : > { %v896_v18 = vadd.f32 %v884_v12, %v837_v30  ;;  %v887_v25 = vpop.f32.mrf.mxu0 }
 0x136   : > { %v768_v35 = vpop.f32.mrf.mxu2 }
 0x137   : > { %v778_v36 = vadd.f32 %v768_v35, %v721_v34  ;;  %v828_v37 = vpop.f32.mrf.mxu3  ;;  %901 = sbr.rel (%p1215_p2) target bundleno = 325 (0x145), region = 36 }
 0x139   : > { %v838_v32 = vadd.f32 %v828_v37, %v778_v36 }
 0x13b   : > { %v897_v22 = vadd.f32 %v887_v25, %v838_v32 }
 0x13c   : > { %vm902_vm4 = vcmask 64512  }
 0x13d   : > { %903 = vst.msk [vmem:[#allocation2] sm:$0xff] %vm902_vm4, %v1791_v38 }
 0x13e   : > { %904 = vst.msk [vmem:[#allocation2 + $0x8] sm:$0xff] %vm902_vm4, %v1793_v47 }
 0x13f   : > { %905 = vst.msk [vmem:[#allocation2 + $0x10] sm:$0xff] %vm902_vm4, %v1795_v55 }
 0x140   : > { %906 = vst.msk [vmem:[#allocation2 + $0x18] sm:$0xff] %vm902_vm4, %v893_v63 }
 0x141   : > { %907 = vst.msk [vmem:[#allocation2 + $0x20] sm:$0xff] %vm902_vm4, %v894_v9 }
 0x142   : > { %908 = vst.msk [vmem:[#allocation2 + $0x28] sm:$0xff] %vm902_vm4, %v895_v13 }
 0x143   : > { %909 = vst.msk [vmem:[#allocation2 + $0x30] sm:$0xff] %vm902_vm4, %v896_v18 }
 0x144   : > { %910 = vst.msk [vmem:[#allocation2 + $0x38] sm:$0xff] %vm902_vm4, %v897_v22 }
 0x145 PF: > { %p1216_p3 = scmp.le.s32.totalorder %s1406_s15, 0 }
 0x147   : > { %914 = sbr.rel (%p1216_p3) target bundleno = 343 (0x157), region = 40 }
 0x14c   : > { %v915_v26 = vld [vmem:[#allocation2] sm:$0xff]  ;;  %vm931_vm5 = vcmask 64512   ;;  %v916_v27 = vld [vmem:[#allocation2 + $0x8] sm:$0xff]  ;;  %v917_v28 = vld [vmem:[#allocation2 + $0x10] sm:$0xff] }
 0x14d   : > { %v923_v29 = vadd.f32 %v915_v26, %v1791_v38  ;;  %v924_v39 = vadd.f32 %v916_v27, %v1793_v47  ;;  %v925_v40 = vadd.f32 %v917_v28, %v1795_v55  ;;  %v918_v41 = vld [vmem:[#allocation2 + $0x18] sm:$0xff]  ;;  %v919_v43 = vld [vmem:[#allocation2 + $0x20] sm:$0xff]  ;;  %v920_v44 = vld [vmem:[#allocation2 + $0x28] sm:$0xff] }
 0x14e   : > { %v926_v45 = vadd.f32 %v918_v41, %v893_v63  ;;  %v921_v46 = vld [vmem:[#allocation2 + $0x30] sm:$0xff]  ;;  %v927_v48 = vadd.f32 %v919_v43, %v894_v9  ;;  %v922_v49 = vld [vmem:[#allocation2 + $0x38] sm:$0xff]  ;;  %v928_v51 = vadd.f32 %v920_v44, %v895_v13 }
 0x14f   : > { %932 = vst.msk [vmem:[#allocation2] sm:$0xff] %vm931_vm5, %v923_v29  ;;  %v929_v42 = vadd.f32 %v921_v46, %v896_v18  ;;  %v930_v38 = vadd.f32 %v922_v49, %v897_v22 }
 0x150   : > { %933 = vst.msk [vmem:[#allocation2 + $0x8] sm:$0xff] %vm931_vm5, %v924_v39 }
 0x151   : > { %934 = vst.msk [vmem:[#allocation2 + $0x10] sm:$0xff] %vm931_vm5, %v925_v40 }
 0x152   : > { %935 = vst.msk [vmem:[#allocation2 + $0x18] sm:$0xff] %vm931_vm5, %v926_v45 }
 0x153   : > { %936 = vst.msk [vmem:[#allocation2 + $0x20] sm:$0xff] %vm931_vm5, %v927_v48 }
 0x154   : > { %937 = vst.msk [vmem:[#allocation2 + $0x28] sm:$0xff] %vm931_vm5, %v928_v51 }
 0x155   : > { %938 = vst.msk [vmem:[#allocation2 + $0x30] sm:$0xff] %vm931_vm5, %v929_v42 }
 0x156   : > { %939 = vst.msk [vmem:[#allocation2 + $0x38] sm:$0xff] %vm931_vm5, %v930_v38 }
 0x157 PF: > { %p1217_p4 = scmp.ne.s32.totalorder %s1406_s15, 2 }
 0x159   : > { %943 = sbr.rel (%p1217_p4) target bundleno = 362 (0x16a), region = 44 }
 0x15e   : > { %v944_v47 = vld [vmem:[#allocation2] sm:$0xff]  ;;  %vm964_vm6 = vcmask 64512   ;;  %v945_v53 = vld [vmem:[#allocation2 + $0x8] sm:$0xff]  ;;  %v946_v54 = vld [vmem:[#allocation2 + $0x10] sm:$0xff] }
 0x15f   : > { %v1319_v52 = vld [vmem:[%s1891_s2] ss:$0 sm:$0xff]  ;;  %v947_v55 = vld [vmem:[#allocation2 + $0x18] sm:$0xff]  ;;  %v949_v60 = vld [vmem:[#allocation2 + $0x28] sm:$0xff] }
 0x160   : > { %v956_v56 = vadd.f32 %v1319_v52, %v944_v47  ;;  %v957_v57 = vadd.f32 %v1319_v52, %v945_v53  ;;  %v958_v59 = vadd.f32 %v1319_v52, %v946_v54  ;;  %v948_v50 = vld [vmem:[#allocation2 + $0x20] sm:$0xff]  ;;  %v959_v61 = vadd.f32 %v1319_v52, %v947_v55  ;;  %v950_v62 = vld [vmem:[#allocation2 + $0x30] sm:$0xff]  ;;  %v951_v0 = vld [vmem:[#allocation2 + $0x38] sm:$0xff] }
 0x161   : > { %v960_v63 = vadd.f32 %v1319_v52, %v948_v50  ;;  %v961_v1 = vadd.f32 %v1319_v52, %v949_v60  ;;  %v962_v3 = vadd.f32 %v1319_v52, %v950_v62  ;;  %v963_v4 = vadd.f32 %v1319_v52, %v951_v0 }
 0x162   : > { %965 = vst.msk [vmem:[%s1799_s23] sm:$0xff] %vm964_vm6, %v956_v56 }
 0x163   : > { %966 = vst.msk [vmem:[%s1799_s23 + $0x8] sm:$0xff] %vm964_vm6, %v957_v57 }
 0x164   : > { %967 = vst.msk [vmem:[%s1799_s23 + $0x10] sm:$0xff] %vm964_vm6, %v958_v59 }
 0x165   : > { %968 = vst.msk [vmem:[%s1799_s23 + $0x18] sm:$0xff] %vm964_vm6, %v959_v61 }
 0x166   : > { %969 = vst.msk [vmem:[%s1799_s23 + $0x20] sm:$0xff] %vm964_vm6, %v960_v63 }
 0x167   : > { %970 = vst.msk [vmem:[%s1799_s23 + $0x28] sm:$0xff] %vm964_vm6, %v961_v1 }
 0x168   : > { %971 = vst.msk [vmem:[%s1799_s23 + $0x30] sm:$0xff] %vm964_vm6, %v962_v3 }
 0x169   : > { %972 = vst.msk [vmem:[%s1799_s23 + $0x38] sm:$0xff] %vm964_vm6, %v963_v4 }
 0x16a PF: > { %s1219_s15 = sshll.u32 %s1410_s16, 3  ;;  %s1229_s4 = smul.u32 40, %s1414_s17 }
 0x16b   : > { %s989_s5 = sshll.u32 %s1799_s23, 4  ;;  %s974_s30 = scalar_lea.sflag [#allocation4], %s240_s11  ;;  %s990_s5 = int_to_ptr.vmem [resolvable:$true] %s989_s5 }
 0x16c   : > { %s986_s8 = sadd.s32 %s1229_s4, %s1219_s15  ;;  %s1340_s23 = scalar_lea.hbm %s1892_s3, 640 }
 0x16d   : > { %s1220_s9 = sshll.u32 %s986_s8, 3 }
 0x16e   : > { %s988_s22 = scalar_lea.hbm %s1892_s3, %s1220_s9 }
 0x16f   : > { %s991_s29 = sshll.u32 %s988_s22, 4  ;;  %s992_s29 = int_to_ptr.hbm [resolvable:$true] %s991_s29 }
 0x170   : > { %s1334_s0 = sshra.s32 %s992_s29, 4  ;;  %s1335_s0 = int_to_ptr.hbm [resolvable:$true] %s1334_s0 }
 0x171   : > { %s1336_s1 = scalar_lea.hbm %s1335_s0, 64  ;;  %p1341_p10 = scmp.lt.s32.totalorder %s1335_s0, %s1892_s3 }
 0x172   : > { %p1337_p5 = scmp.ne.s32.totalorder %s1335_s0, %s1336_s1  ;;  %p1342_p11 = scmp.lt.s32.totalorder %s1340_s23, %s1336_s1 }
 0x174   : > { %p1338_p8 = pnand %p1337_p5, %p1516_p6  ;;  %p1343_p12 = por %p1342_p11, %p1341_p10 }
 0x176   : > { %p1339_p9 = pneg %p1338_p8 }
 0x178   : > { %p1344_p13 = pnand %p1343_p12, %p1339_p9 }
 0x17a   : > { %1347 = shalt.err (!%p1344_p13)
}
 0x17b   : > { %s1432_s11 = smov 128   ;;  %s1433_s8 = smov 8  }
 0x17c   : > { %1230 = dma.vmem_to_hbm [thread:$0]  (%p1516_p6), %s990_s5, 1024, %s992_s29, %s974_s30, %s1432_s11, %s1432_s11, %s1433_s8  }
 0x17d PF: > { %p1236_p0 = scmp.ge.s32.totalorder %s1430_s21, 2  ;;  %s1006_s9 = sand.u32 1, %s1394_s12  }
 0x17e   : > { %s1007_s7 = scalar_lea.sflag [#allocation4], %s1006_s9 }
 0x17f   : > { %p1233_p1 = pnand %p1236_p0, %p1523_p7 }
 0x181   : > { %p1234_p2 = pneg %p1233_p1 }
 0x183   : > { %1389 = dma.done.wait (%p1234_p2), %s1007_s7, 1024  }
 0x184   : > { %1391 = vsyncadd (%p1234_p2), %s1007_s7, 4294966272  ;;  %s16_s21 = sadd.s32 1, %s1430_s21   ;;  %s1899_s12 = smov %s1398_s13 }
 0x185   : > { %p13_p3 = scmp.ge.s32.totalorder %s16_s21, 32   ;;  %s1900_s13 = smov %s1402_s14 }
 0x186   : > { %s1901_s14 = smov %s1537_s6  ;;  %s1902_s15 = smov %s1418_s18 }
 0x187   : > { %s1903_s16 = smov %s1422_s19  ;;  %s1904_s17 = smov %s1426_s20 }
 0x188   : > { %s1905_s18 = smov %s1909_s24  ;;  %s1906_s19 = smov %s1913_s25 }
 0x189   : > { %s1907_s20 = smov %s1917_s26  ;;  %15 = sbr.rel (!%p13_p3) target bundleno = 9 (0x9), region = 93 }
 0x18e   :  { %1013 = vsyncpa [#allocation4], 1 }
 0x18f   :  { %1015 = vsyncpa [#allocation4 + $0x1], 1 }

</bundles_post_ra>
